<compile_context>
chip_gen: v7x
topology: tpu7x:2x2x1
jax: 0.10.0
libtpu: 0.0.40
codegen_flags: <defaults>
</compile_context>

<pallas_src>
import functools

import jax
import jax.numpy as jnp
import numpy as np
from jax.experimental import pallas as pl
from jax.experimental.pallas import tpu as pltpu


# ---------------------------------------------------------------------------
# Pallas kernels
# ---------------------------------------------------------------------------
def _gru_rec_kernel(gi_ref, whh_ref, bhh_ref, out_ref, hfin_ref, h_scratch):
    """Recurrent part of one bidirectional GRU layer.

    Grid = (2, T // TT): axis 0 = direction (parallel), axis 1 = time blocks (sequential).
    gi_ref:  (1, TT, B, 3H)  pre-projected input gates (x @ W_ih + b_ih)
    whh_ref: (1, H, 3H), bhh_ref: (1, 1, 3H)
    out_ref: (1, TT, B, H),  hfin_ref: (1, B, H)
    h_scratch: (B, H) float32, persists across the sequential time axis.
    """
    d = pl.program_id(0)           # 0 = forward, 1 = backward
    tb = pl.program_id(1)          # time-block index
    n_tb = pl.num_programs(1)
    TT = gi_ref.shape[1]
    H = h_scratch.shape[-1]

    @pl.when(tb == 0)
    def _():
        h_scratch[...] = jnp.zeros_like(h_scratch)

    # Weights are loop-invariant for the whole time axis (resident block, loaded once here).
    w_hh = whh_ref[0]                               # (H, 3H)
    b_hh = bhh_ref[0].astype(jnp.float32)           # (1, 3H)

    def step(s, h):
        # Within-block timestep; walked in reverse for the backward direction.
        idx = s + d * (TT - 1 - 2 * s)
        gi = gi_ref[0, idx].astype(jnp.float32)     # (B, 3H)
        gh = jnp.dot(h.astype(w_hh.dtype), w_hh,
                     preferred_element_type=jnp.float32) + b_hh
        r = jax.nn.sigmoid(gi[:, :H] + gh[:, :H])
        z = jax.nn.sigmoid(gi[:, H:2 * H] + gh[:, H:2 * H])
        n = jnp.tanh(gi[:, 2 * H:] + r * gh[:, 2 * H:])
        h_new = (1.0 - z) * n + z * h
        out_ref[0, idx] = h_new.astype(out_ref.dtype)
        return h_new

    h = jax.lax.fori_loop(0, TT, step, h_scratch[...], unroll=True)
    h_scratch[...] = h

    @pl.when(tb == n_tb - 1)       # only write the final hidden state once
    def _():
        hfin_ref[0] = h.astype(hfin_ref.dtype)


def _sum_dirs_kernel(x_ref, o_ref):
    """x_ref: (2, TT, B, H) -> o_ref: (TT, B, H) = fwd + bwd."""
    o_ref[...] = (x_ref[0] + x_ref[1]).astype(o_ref.dtype)


# ---------------------------------------------------------------------------
# Wrappers
# ---------------------------------------------------------------------------
def _pick_tile(total, preferred):
    """Largest divisor of `total` that is <= preferred."""
    t = max(1, min(total, preferred))
    while total % t != 0:
        t -= 1
    return t


def gru_layer_bidir(gi, w_hh, b_hh, out_dtype, time_block):
    """Run both directions of one GRU layer.

    gi:   (2, T, B, 3H) pre-projected input gates, [fwd, bwd]
    w_hh: (2, H, 3H); b_hh: (2, 1, 3H)
    Returns out: (2, T, B, H), hfin: (2, B, H).
    """
    _, T, B, G = gi.shape
    H = w_hh.shape[1]
    TT = _pick_tile(T, time_block)
    n_tb = T // TT

    def data_map(d, i):
        # Forward walks time blocks 0..n-1; backward walks n-1..0.
        return (d, i + d * (n_tb - 1 - 2 * i), 0, 0)

    out, hfin = pl.pallas_call(
        _gru_rec_kernel,
        out_shape=(jax.ShapeDtypeStruct((2, T, B, H), out_dtype),
                   jax.ShapeDtypeStruct((2, B, H), out_dtype)),
        grid_spec=pltpu.PrefetchScalarGridSpec(
            num_scalar_prefetch=0,
            grid=(2, n_tb),
            in_specs=[
                pl.BlockSpec((1, TT, B, G), data_map),
                pl.BlockSpec((1, H, G), lambda d, i: (d, 0, 0)),
                pl.BlockSpec((1, 1, G), lambda d, i: (d, 0, 0)),
            ],
            out_specs=[
                pl.BlockSpec((1, TT, B, H), data_map),
                pl.BlockSpec((1, B, H), lambda d, i: (d, 0, 0)),
            ],
            scratch_shapes=[pltpu.VMEM((B, H), jnp.float32)],
        ),
        compiler_params=pltpu.CompilerParams(
            dimension_semantics=("parallel", "arbitrary")),
    )(gi, w_hh, b_hh)
    return out, hfin


def sum_directions(out_pair, time_block=256):
    """out_pair: (2, T, B, H) -> (T, B, H) = fwd + bwd (tiled, gridded)."""
    _, T, B, H = out_pair.shape
    TT = _pick_tile(T, time_block)
    return pl.pallas_call(
        _sum_dirs_kernel,
        out_shape=jax.ShapeDtypeStruct((T, B, H), out_pair.dtype),
        grid_spec=pltpu.PrefetchScalarGridSpec(
            num_scalar_prefetch=0,
            grid=(T // TT,),
            in_specs=[pl.BlockSpec((2, TT, B, H), lambda i: (0, i, 0, 0))],
            out_specs=pl.BlockSpec((TT, B, H), lambda i: (i, 0, 0)),
        ),
        compiler_params=pltpu.CompilerParams(
            dimension_semantics=("parallel",)),
    )(out_pair)


def encoder_rnn_forward(x, params, num_layers, hidden_size, *,
                        compute_dtype=jnp.float32, time_block=32):
    """Semantics of EncoderRNN.forward (inference)."""
    # TODO(synk): nn.GRU inter-layer dropout is a no-op at inference; omitted here.
    H = hidden_size
    out_dtype = x.dtype
    hiddens = []
    prev = None                                     # (2, T, B, H) after the first layer
    for l in range(num_layers):
        p = params[l]
        w_ih = p["w_ih"].astype(compute_dtype)      # l==0: (2, D, 3H); else (2, 2H, 3H)
        w_hh = p["w_hh"].astype(compute_dtype)      # (2, H, 3H)
        b_ih = p["b_ih"]                            # (2, 1, 3H) f32
        b_hh = p["b_hh"]                            # (2, 1, 3H) f32

        # Hoisted input projection: one big batched matmul (the review's "plain XLA" option).
        if l == 0:
            gi = jnp.einsum("tbd,odg->otbg", x.astype(compute_dtype), w_ih,
                            preferred_element_type=jnp.float32)
        else:
            # Avoid materializing concat([fwd, bwd], -1): contract over (dir_in, H) directly.
            w_ih_r = w_ih.reshape(2, 2, H, 3 * H)   # (dir_out, dir_in, H, 3H)
            gi = jnp.einsum("etbh,oehg->otbg", prev.astype(compute_dtype), w_ih_r,
                            preferred_element_type=jnp.float32)
        gi = (gi + b_ih[:, None]).astype(compute_dtype)     # (2, T, B, 3H)

        prev, hfin = gru_layer_bidir(gi, w_hh, b_hh, out_dtype, time_block)
        hiddens.append(hfin)

    encoder_states = sum_directions(prev)                   # (T, B, H)
    hidden = jnp.concatenate(hiddens, axis=0)               # (2*num_layers, B, H)
    return encoder_states, hidden


# ---------------------------------------------------------------------------
# Pure-JAX reference (for correctness check)
# ---------------------------------------------------------------------------
def _gru_ref_direction(x, w_ih, w_hh, b_ih, b_hh, reverse):
    T, B, D = x.shape
    H = w_hh.shape[0]
    xs = x[::-1] if reverse else x

    def step(h, x_t):
        gi = x_t @ w_ih + b_ih
        gh = h @ w_hh + b_hh
        r = jax.nn.sigmoid(gi[:, :H] + gh[:, :H])
        z = jax.nn.sigmoid(gi[:, H:2 * H] + gh[:, H:2 * H])
        n = jnp.tanh(gi[:, 2 * H:] + r * gh[:, 2 * H:])
        h_new = (1.0 - z) * n + z * h
        return h_new, h_new

    h0 = jnp.zeros((B, H), x.dtype)
    h_fin, outs = jax.lax.scan(step, h0, xs)
    if reverse:
        outs = outs[::-1]
    return outs, h_fin


def encoder_rnn_reference(x, params, num_layers, hidden_size):
    layer_input = x
    hiddens = []
    for l in range(num_layers):
        p = params[l]
        outs = []
        for d, rev in enumerate((False, True)):
            out, h_fin = _gru_ref_direction(
                layer_input, p["w_ih"][d], p["w_hh"][d], p["b_ih"][d], p["b_hh"][d], rev)
            outs.append(out)
            hiddens.append(h_fin)
        layer_input = jnp.concatenate(outs, axis=-1)
    enc = layer_input[..., :hidden_size] + layer_input[..., hidden_size:]
    return enc, jnp.stack(hiddens, axis=0)


# ---------------------------------------------------------------------------
# Deterministic parameter init (PyTorch GRU default: U(-1/sqrt(H), 1/sqrt(H)))
# ---------------------------------------------------------------------------
def init_params(key, input_size, hidden_size, num_layers):
    params = []
    bound = 1.0 / np.sqrt(hidden_size)
    for l in range(num_layers):
        layer_in = input_size if l == 0 else 2 * hidden_size
        w_ih, w_hh, b_ih, b_hh = [], [], [], []
        for _ in range(2):   # fwd, bwd
            key, k1, k2, k3, k4 = jax.random.split(key, 5)
            w_ih.append(jax.random.uniform(k1, (layer_in, 3 * hidden_size),
                                           jnp.float32, -bound, bound))
            w_hh.append(jax.random.uniform(k2, (hidden_size, 3 * hidden_size),
                                           jnp.float32, -bound, bound))
            b_ih.append(jax.random.uniform(k3, (1, 3 * hidden_size),
                                           jnp.float32, -bound, bound))
            b_hh.append(jax.random.uniform(k4, (1, 3 * hidden_size),
                                           jnp.float32, -bound, bound))
        params.append(dict(w_ih=jnp.stack(w_ih), w_hh=jnp.stack(w_hh),
                           b_ih=jnp.stack(b_ih), b_hh=jnp.stack(b_hh)))
    return params, key


# ---------------------------------------------------------------------------
# Main
# ---------------------------------------------------------------------------
if __name__ == "__main__":
    seq_len, batch, input_size, hidden_size, num_layers = 8, 4, 16, 32, 2

    key = jax.random.PRNGKey(0)
    params, key = init_params(key, input_size, hidden_size, num_layers)
    key, kx = jax.random.split(key)
    x = jax.random.normal(kx, (seq_len, batch, input_size), jnp.float32)

    run_f32 = jax.jit(functools.partial(
        encoder_rnn_forward, num_layers=num_layers, hidden_size=hidden_size,
        time_block=4))                       # time_block=4 exercises the blocked time axis
    enc, hidden = run_f32(x, params)
    enc = jax.block_until_ready(enc)
    hidden = jax.block_until_ready(hidden)

    # Verify against pure-JAX reference.
    enc_ref, hidden_ref = encoder_rnn_reference(x, params, num_layers, hidden_size)
    assert enc.shape == (seq_len, batch, hidden_size)
    assert hidden.shape == (num_layers * 2, batch, hidden_size)
    np.testing.assert_allclose(np.asarray(enc), np.asarray(enc_ref), rtol=2e-4, atol=2e-4)
    np.testing.assert_allclose(np.asarray(hidden), np.asarray(hidden_ref), rtol=2e-4, atol=2e-4)

    # Mixed-precision path (bf16 weights / gi stream, f32 state + gates): sanity check.
    run_bf16 = jax.jit(functools.partial(
        encoder_rnn_forward, num_layers=num_layers, hidden_size=hidden_size,
        time_block=4, compute_dtype=jnp.bfloat16))
    enc_bf, hid_bf = run_bf16(x, params)
    enc_bf = jax.block_until_ready(enc_bf)
    assert enc_bf.shape == enc.shape and hid_bf.shape == hidden.shape
    np.testing.assert_allclose(np.asarray(enc_bf), np.asarray(enc_ref), rtol=1e-1, atol=1e-1)

    print("KERNEL_OK")
</pallas_src>

<mosaic_0001>
module attributes {stable_mosaic.version = 11 : i64} {
  func.func @_sum_dirs_kernel(%arg0: i32, %arg1: memref<2x8x4x32xf32, #tpu.memory_space<vmem>>, %arg2: memref<8x4x32xf32, #tpu.memory_space<vmem>>) attributes {dimension_semantics = [#tpu.dimension_semantics<parallel>], iteration_bounds = array<i64: 1>, scalar_prefetch = 0 : i64, scratch_operands = 0 : i64, tpu.core_type = #tpu.core_type<tc>, window_params = [{transform_indices = @transform_0, window_bounds = array<i64: 2, 8, 4, 32>}, {transform_indices = @transform_1, window_bounds = array<i64: 8, 4, 32>}]} {
    %c0 = arith.constant 0 : index
    %c0_0 = arith.constant 0 : index
    %c0_1 = arith.constant 0 : index
    %c0_2 = arith.constant 0 : index
    %0 = vector.load %arg1[%c0, %c0_0, %c0_1, %c0_2] : memref<2x8x4x32xf32, #tpu.memory_space<vmem>>, vector<1x8x4x32xf32>
    %1 = vector.shape_cast %0 : vector<1x8x4x32xf32> to vector<8x4x32xf32>
    %c1 = arith.constant 1 : index
    %c0_3 = arith.constant 0 : index
    %c0_4 = arith.constant 0 : index
    %c0_5 = arith.constant 0 : index
    %2 = vector.load %arg1[%c1, %c0_3, %c0_4, %c0_5] : memref<2x8x4x32xf32, #tpu.memory_space<vmem>>, vector<1x8x4x32xf32>
    %3 = vector.shape_cast %2 : vector<1x8x4x32xf32> to vector<8x4x32xf32>
    %4 = arith.addf %1, %3 : vector<8x4x32xf32>
    %c0_6 = arith.constant 0 : index
    %c0_7 = arith.constant 0 : index
    %c0_8 = arith.constant 0 : index
    %5 = vector.load %arg2[%c0_6, %c0_7, %c0_8] : memref<8x4x32xf32, #tpu.memory_space<vmem>>, vector<8x4x32xf32>
    tpu.vector_store %arg2[%c0_6, %c0_7, %c0_8], %4 {strides = array<i32>} : memref<8x4x32xf32, #tpu.memory_space<vmem>>, vector<8x4x32xf32>,
    return
  }
  func.func @transform_0(%arg0: i32) -> (i32, i32, i32, i32) {
    %c0_i32 = arith.constant 0 : i32
    %c0_i32_0 = arith.constant 0 : i32
    %c0_i32_1 = arith.constant 0 : i32
    %c0_i32_2 = arith.constant 0 : i32
    return %c0_i32, %arg0, %c0_i32_0, %c0_i32_1 : i32, i32, i32, i32
  }
  func.func @transform_1(%arg0: i32) -> (i32, i32, i32) {
    %c0_i32 = arith.constant 0 : i32
    %c0_i32_0 = arith.constant 0 : i32
    %c0_i32_1 = arith.constant 0 : i32
    return %arg0, %c0_i32, %c0_i32_0 : i32, i32, i32
  }
}

module attributes {stable_mosaic.version = 11 : i64} {
  func.func @_gru_rec_kernel(%arg0: i32, %arg1: i32, %arg2: memref<1x4x4x96xf32, #tpu.memory_space<vmem>>, %arg3: memref<1x32x96xf32, #tpu.memory_space<vmem>>, %arg4: memref<1x1x96xf32, #tpu.memory_space<vmem>>, %arg5: memref<1x4x4x32xf32, #tpu.memory_space<vmem>>, %arg6: memref<1x4x32xf32, #tpu.memory_space<vmem>>, %arg7: memref<4x32xf32, #tpu.memory_space<vmem>>) attributes {dimension_semantics = [#tpu.dimension_semantics<parallel>, #tpu.dimension_semantics<arbitrary>], iteration_bounds = array<i64: 2, 2>, scalar_prefetch = 0 : i64, scratch_operands = 1 : i64, tpu.core_type = #tpu.core_type<tc>, window_params = [{transform_indices = @transform_0, window_bounds = array<i64: 1, 4, 4, 96>}, {transform_indices = @transform_1, window_bounds = array<i64: 1, 32, 96>}, {transform_indices = @transform_2, window_bounds = array<i64: 1, 1, 96>}, {transform_indices = @transform_3, window_bounds = array<i64: 1, 4, 4, 32>}, {transform_indices = @transform_4, window_bounds = array<i64: 1, 4, 32>}]} {
    %c0_i32 = arith.constant 0 : i32
    %0 = arith.cmpi eq, %arg1, %c0_i32 : i32
    %1 = arith.extui %0 : i1 to i32
    %c0_i32_0 = arith.constant 0 : i32
    %2 = arith.cmpi ne, %1, %c0_i32_0 : i32
    scf.if %2 {
      %cst_60 = arith.constant 0.000000e+00 : f32
      %172 = vector.broadcast %cst_60 : f32 to vector<4x32xf32>
      %c0_61 = arith.constant 0 : index
      %c0_62 = arith.constant 0 : index
      %173 = vector.load %arg7[%c0_61, %c0_62] : memref<4x32xf32, #tpu.memory_space<vmem>>, vector<4x32xf32>
      tpu.vector_store %arg7[%c0_61, %c0_62], %172 {strides = array<i32>} : memref<4x32xf32, #tpu.memory_space<vmem>>, vector<4x32xf32>,
    } else {
    }
    %c0 = arith.constant 0 : index
    %c0_1 = arith.constant 0 : index
    %c0_2 = arith.constant 0 : index
    %3 = vector.load %arg3[%c0, %c0_1, %c0_2] : memref<1x32x96xf32, #tpu.memory_space<vmem>>, vector<1x32x96xf32>
    %4 = vector.shape_cast %3 : vector<1x32x96xf32> to vector<32x96xf32>
    %c0_3 = arith.constant 0 : index
    %c0_4 = arith.constant 0 : index
    %c0_5 = arith.constant 0 : index
    %5 = vector.load %arg4[%c0_3, %c0_4, %c0_5] : memref<1x1x96xf32, #tpu.memory_space<vmem>>, vector<1x1x96xf32>
    %6 = vector.shape_cast %5 : vector<1x1x96xf32> to vector<1x96xf32>
    %c0_6 = arith.constant 0 : index
    %c0_7 = arith.constant 0 : index
    %7 = vector.load %arg7[%c0_6, %c0_7] : memref<4x32xf32, #tpu.memory_space<vmem>>, vector<4x32xf32>
    %c0_i32_8 = arith.constant 0 : i32
    %c2_i32 = arith.constant 2 : i32
    %8 = arith.muli %c2_i32, %c0_i32_8 : i32
    %c3_i32 = arith.constant 3 : i32
    %9 = arith.subi %c3_i32, %8 : i32
    %10 = arith.muli %arg0, %9 : i32
    %11 = arith.addi %c0_i32_8, %10 : i32
    %c0_9 = arith.constant 0 : index
    %12 = arith.index_cast %11 : i32 to index
    %c0_10 = arith.constant 0 : index
    %c0_11 = arith.constant 0 : index
    %13 = vector.load %arg2[%c0_9, %12, %c0_10, %c0_11] : memref<1x4x4x96xf32, #tpu.memory_space<vmem>>, vector<1x1x4x96xf32>
    %14 = vector.shape_cast %13 : vector<1x1x4x96xf32> to vector<4x96xf32>
    %cst = arith.constant dense<0.000000e+00> : vector<4x96xf32>
    %15 = tpu.matmul %7, %4, %cst {dimension_numbers = #tpu.dot_dimension_numbers<[1], [0], [0], [1], [0, 0, 1, 1], [], []>} : vector<4x32xf32>, vector<32x96xf32>, vector<4x96xf32> -> vector<4x96xf32>
    %16 = vector.broadcast %6 : vector<1x96xf32> to vector<4x96xf32>
    %17 = arith.addf %15, %16 : vector<4x96xf32>
    %18 = vector.extract_strided_slice %14 {offsets = [0, 0], sizes = [4, 32], strides = [1, 1]} : vector<4x96xf32> to vector<4x32xf32>
    %19 = vector.extract_strided_slice %17 {offsets = [0, 0], sizes = [4, 32], strides = [1, 1]} : vector<4x96xf32> to vector<4x32xf32>
    %20 = arith.addf %18, %19 : vector<4x32xf32>
    %21 = arith.negf %20 : vector<4x32xf32>
    %22 = math.exp %21 : vector<4x32xf32>
    %cst_12 = arith.constant 1.000000e+00 : f32
    %23 = vector.broadcast %cst_12 : f32 to vector<4x32xf32>
    %24 = arith.addf %23, %22 : vector<4x32xf32>
    %25 = arith.divf %23, %24 : vector<4x32xf32>
    %26 = vector.extract_strided_slice %14 {offsets = [0, 32], sizes = [4, 32], strides = [1, 1]} : vector<4x96xf32> to vector<4x32xf32>
    %27 = vector.extract_strided_slice %17 {offsets = [0, 32], sizes = [4, 32], strides = [1, 1]} : vector<4x96xf32> to vector<4x32xf32>
    %28 = arith.addf %26, %27 : vector<4x32xf32>
    %29 = arith.negf %28 : vector<4x32xf32>
    %30 = math.exp %29 : vector<4x32xf32>
    %cst_13 = arith.constant 1.000000e+00 : f32
    %31 = vector.broadcast %cst_13 : f32 to vector<4x32xf32>
    %32 = arith.addf %31, %30 : vector<4x32xf32>
    %33 = arith.divf %31, %32 : vector<4x32xf32>
    %34 = vector.extract_strided_slice %14 {offsets = [0, 64], sizes = [4, 32], strides = [1, 1]} : vector<4x96xf32> to vector<4x32xf32>
    %35 = vector.extract_strided_slice %17 {offsets = [0, 64], sizes = [4, 32], strides = [1, 1]} : vector<4x96xf32> to vector<4x32xf32>
    %36 = arith.mulf %25, %35 : vector<4x32xf32>
    %37 = arith.addf %34, %36 : vector<4x32xf32>
    %38 = math.tanh %37 : vector<4x32xf32>
    %cst_14 = arith.constant 1.000000e+00 : f32
    %39 = vector.broadcast %cst_14 : f32 to vector<4x32xf32>
    %40 = arith.subf %39, %33 : vector<4x32xf32>
    %41 = arith.mulf %40, %38 : vector<4x32xf32>
    %42 = arith.mulf %33, %7 : vector<4x32xf32>
    %43 = arith.addf %41, %42 : vector<4x32xf32>
    %c0_15 = arith.constant 0 : index
    %44 = arith.index_cast %11 : i32 to index
    %c0_16 = arith.constant 0 : index
    %c0_17 = arith.constant 0 : index
    %45 = vector.load %arg5[%c0_15, %44, %c0_16, %c0_17] : memref<1x4x4x32xf32, #tpu.memory_space<vmem>>, vector<1x1x4x32xf32>
    %46 = vector.shape_cast %45 : vector<1x1x4x32xf32> to vector<4x32xf32>
    %47 = vector.shape_cast %43 : vector<4x32xf32> to vector<1x1x4x32xf32>
    tpu.vector_store %arg5[%c0_15, %44, %c0_16, %c0_17], %47 {strides = array<i32>} : memref<1x4x4x32xf32, #tpu.memory_space<vmem>>, vector<1x1x4x32xf32>,
    %c1_i32 = arith.constant 1 : i32
    %c2_i32_18 = arith.constant 2 : i32
    %48 = arith.muli %c2_i32_18, %c1_i32 : i32
    %c3_i32_19 = arith.constant 3 : i32
    %49 = arith.subi %c3_i32_19, %48 : i32
    %50 = arith.muli %arg0, %49 : i32
    %51 = arith.addi %c1_i32, %50 : i32
    %c0_20 = arith.constant 0 : index
    %52 = arith.index_cast %51 : i32 to index
    %c0_21 = arith.constant 0 : index
    %c0_22 = arith.constant 0 : index
    %53 = vector.load %arg2[%c0_20, %52, %c0_21, %c0_22] : memref<1x4x4x96xf32, #tpu.memory_space<vmem>>, vector<1x1x4x96xf32>
    %54 = vector.shape_cast %53 : vector<1x1x4x96xf32> to vector<4x96xf32>
    %cst_23 = arith.constant dense<0.000000e+00> : vector<4x96xf32>
    %55 = tpu.matmul %43, %4, %cst_23 {dimension_numbers = #tpu.dot_dimension_numbers<[1], [0], [0], [1], [0, 0, 1, 1], [], []>} : vector<4x32xf32>, vector<32x96xf32>, vector<4x96xf32> -> vector<4x96xf32>
    %56 = vector.broadcast %6 : vector<1x96xf32> to vector<4x96xf32>
    %57 = arith.addf %55, %56 : vector<4x96xf32>
    %58 = vector.extract_strided_slice %54 {offsets = [0, 0], sizes = [4, 32], strides = [1, 1]} : vector<4x96xf32> to vector<4x32xf32>
    %59 = vector.extract_strided_slice %57 {offsets = [0, 0], sizes = [4, 32], strides = [1, 1]} : vector<4x96xf32> to vector<4x32xf32>
    %60 = arith.addf %58, %59 : vector<4x32xf32>
    %61 = arith.negf %60 : vector<4x32xf32>
    %62 = math.exp %61 : vector<4x32xf32>
    %cst_24 = arith.constant 1.000000e+00 : f32
    %63 = vector.broadcast %cst_24 : f32 to vector<4x32xf32>
    %64 = arith.addf %63, %62 : vector<4x32xf32>
    %65 = arith.divf %63, %64 : vector<4x32xf32>
    %66 = vector.extract_strided_slice %54 {offsets = [0, 32], sizes = [4, 32], strides = [1, 1]} : vector<4x96xf32> to vector<4x32xf32>
    %67 = vector.extract_strided_slice %57 {offsets = [0, 32], sizes = [4, 32], strides = [1, 1]} : vector<4x96xf32> to vector<4x32xf32>
    %68 = arith.addf %66, %67 : vector<4x32xf32>
    %69 = arith.negf %68 : vector<4x32xf32>
    %70 = math.exp %69 : vector<4x32xf32>
    %cst_25 = arith.constant 1.000000e+00 : f32
    %71 = vector.broadcast %cst_25 : f32 to vector<4x32xf32>
    %72 = arith.addf %71, %70 : vector<4x32xf32>
    %73 = arith.divf %71, %72 : vector<4x32xf32>
    %74 = vector.extract_strided_slice %54 {offsets = [0, 64], sizes = [4, 32], strides = [1, 1]} : vector<4x96xf32> to vector<4x32xf32>
    %75 = vector.extract_strided_slice %57 {offsets = [0, 64], sizes = [4, 32], strides = [1, 1]} : vector<4x96xf32> to vector<4x32xf32>
    %76 = arith.mulf %65, %75 : vector<4x32xf32>
    %77 = arith.addf %74, %76 : vector<4x32xf32>
    %78 = math.tanh %77 : vector<4x32xf32>
    %cst_26 = arith.constant 1.000000e+00 : f32
    %79 = vector.broadcast %cst_26 : f32 to vector<4x32xf32>
    %80 = arith.subf %79, %73 : vector<4x32xf32>
    %81 = arith.mulf %80, %78 : vector<4x32xf32>
    %82 = arith.mulf %73, %43 : vector<4x32xf32>
    %83 = arith.addf %81, %82 : vector<4x32xf32>
    %c0_27 = arith.constant 0 : index
    %84 = arith.index_cast %51 : i32 to index
    %c0_28 = arith.constant 0 : index
    %c0_29 = arith.constant 0 : index
    %85 = vector.load %arg5[%c0_27, %84, %c0_28, %c0_29] : memref<1x4x4x32xf32, #tpu.memory_space<vmem>>, vector<1x1x4x32xf32>
    %86 = vector.shape_cast %85 : vector<1x1x4x32xf32> to vector<4x32xf32>
    %87 = vector.shape_cast %83 : vector<4x32xf32> to vector<1x1x4x32xf32>
    tpu.vector_store %arg5[%c0_27, %84, %c0_28, %c0_29], %87 {strides = array<i32>} : memref<1x4x4x32xf32, #tpu.memory_space<vmem>>, vector<1x1x4x32xf32>,
    %c2_i32_30 = arith.constant 2 : i32
    %c2_i32_31 = arith.constant 2 : i32
    %88 = arith.muli %c2_i32_31, %c2_i32_30 : i32
    %c3_i32_32 = arith.constant 3 : i32
    %89 = arith.subi %c3_i32_32, %88 : i32
    %90 = arith.muli %arg0, %89 : i32
    %91 = arith.addi %c2_i32_30, %90 : i32
    %c0_33 = arith.constant 0 : index
    %92 = arith.index_cast %91 : i32 to index
    %c0_34 = arith.constant 0 : index
    %c0_35 = arith.constant 0 : index
    %93 = vector.load %arg2[%c0_33, %92, %c0_34, %c0_35] : memref<1x4x4x96xf32, #tpu.memory_space<vmem>>, vector<1x1x4x96xf32>
    %94 = vector.shape_cast %93 : vector<1x1x4x96xf32> to vector<4x96xf32>
    %cst_36 = arith.constant dense<0.000000e+00> : vector<4x96xf32>
    %95 = tpu.matmul %83, %4, %cst_36 {dimension_numbers = #tpu.dot_dimension_numbers<[1], [0], [0], [1], [0, 0, 1, 1], [], []>} : vector<4x32xf32>, vector<32x96xf32>, vector<4x96xf32> -> vector<4x96xf32>
    %96 = vector.broadcast %6 : vector<1x96xf32> to vector<4x96xf32>
    %97 = arith.addf %95, %96 : vector<4x96xf32>
    %98 = vector.extract_strided_slice %94 {offsets = [0, 0], sizes = [4, 32], strides = [1, 1]} : vector<4x96xf32> to vector<4x32xf32>
    %99 = vector.extract_strided_slice %97 {offsets = [0, 0], sizes = [4, 32], strides = [1, 1]} : vector<4x96xf32> to vector<4x32xf32>
    %100 = arith.addf %98, %99 : vector<4x32xf32>
    %101 = arith.negf %100 : vector<4x32xf32>
    %102 = math.exp %101 : vector<4x32xf32>
    %cst_37 = arith.constant 1.000000e+00 : f32
    %103 = vector.broadcast %cst_37 : f32 to vector<4x32xf32>
    %104 = arith.addf %103, %102 : vector<4x32xf32>
    %105 = arith.divf %103, %104 : vector<4x32xf32>
    %106 = vector.extract_strided_slice %94 {offsets = [0, 32], sizes = [4, 32], strides = [1, 1]} : vector<4x96xf32> to vector<4x32xf32>
    %107 = vector.extract_strided_slice %97 {offsets = [0, 32], sizes = [4, 32], strides = [1, 1]} : vector<4x96xf32> to vector<4x32xf32>
    %108 = arith.addf %106, %107 : vector<4x32xf32>
    %109 = arith.negf %108 : vector<4x32xf32>
    %110 = math.exp %109 : vector<4x32xf32>
    %cst_38 = arith.constant 1.000000e+00 : f32
    %111 = vector.broadcast %cst_38 : f32 to vector<4x32xf32>
    %112 = arith.addf %111, %110 : vector<4x32xf32>
    %113 = arith.divf %111, %112 : vector<4x32xf32>
    %114 = vector.extract_strided_slice %94 {offsets = [0, 64], sizes = [4, 32], strides = [1, 1]} : vector<4x96xf32> to vector<4x32xf32>
    %115 = vector.extract_strided_slice %97 {offsets = [0, 64], sizes = [4, 32], strides = [1, 1]} : vector<4x96xf32> to vector<4x32xf32>
    %116 = arith.mulf %105, %115 : vector<4x32xf32>
    %117 = arith.addf %114, %116 : vector<4x32xf32>
    %118 = math.tanh %117 : vector<4x32xf32>
    %cst_39 = arith.constant 1.000000e+00 : f32
    %119 = vector.broadcast %cst_39 : f32 to vector<4x32xf32>
    %120 = arith.subf %119, %113 : vector<4x32xf32>
    %121 = arith.mulf %120, %118 : vector<4x32xf32>
    %122 = arith.mulf %113, %83 : vector<4x32xf32>
    %123 = arith.addf %121, %122 : vector<4x32xf32>
    %c0_40 = arith.constant 0 : index
    %124 = arith.index_cast %91 : i32 to index
    %c0_41 = arith.constant 0 : index
    %c0_42 = arith.constant 0 : index
    %125 = vector.load %arg5[%c0_40, %124, %c0_41, %c0_42] : memref<1x4x4x32xf32, #tpu.memory_space<vmem>>, vector<1x1x4x32xf32>
    %126 = vector.shape_cast %125 : vector<1x1x4x32xf32> to vector<4x32xf32>
    %127 = vector.shape_cast %123 : vector<4x32xf32> to vector<1x1x4x32xf32>
    tpu.vector_store %arg5[%c0_40, %124, %c0_41, %c0_42], %127 {strides = array<i32>} : memref<1x4x4x32xf32, #tpu.memory_space<vmem>>, vector<1x1x4x32xf32>,
    %c3_i32_43 = arith.constant 3 : i32
    %c2_i32_44 = arith.constant 2 : i32
    %128 = arith.muli %c2_i32_44, %c3_i32_43 : i32
    %c3_i32_45 = arith.constant 3 : i32
    %129 = arith.subi %c3_i32_45, %128 : i32
    %130 = arith.muli %arg0, %129 : i32
    %131 = arith.addi %c3_i32_43, %130 : i32
    %c0_46 = arith.constant 0 : index
    %132 = arith.index_cast %131 : i32 to index
    %c0_47 = arith.constant 0 : index
    %c0_48 = arith.constant 0 : index
    %133 = vector.load %arg2[%c0_46, %132, %c0_47, %c0_48] : memref<1x4x4x96xf32, #tpu.memory_space<vmem>>, vector<1x1x4x96xf32>
    %134 = vector.shape_cast %133 : vector<1x1x4x96xf32> to vector<4x96xf32>
    %cst_49 = arith.constant dense<0.000000e+00> : vector<4x96xf32>
    %135 = tpu.matmul %123, %4, %cst_49 {dimension_numbers = #tpu.dot_dimension_numbers<[1], [0], [0], [1], [0, 0, 1, 1], [], []>} : vector<4x32xf32>, vector<32x96xf32>, vector<4x96xf32> -> vector<4x96xf32>
    %136 = vector.broadcast %6 : vector<1x96xf32> to vector<4x96xf32>
    %137 = arith.addf %135, %136 : vector<4x96xf32>
    %138 = vector.extract_strided_slice %134 {offsets = [0, 0], sizes = [4, 32], strides = [1, 1]} : vector<4x96xf32> to vector<4x32xf32>
    %139 = vector.extract_strided_slice %137 {offsets = [0, 0], sizes = [4, 32], strides = [1, 1]} : vector<4x96xf32> to vector<4x32xf32>
    %140 = arith.addf %138, %139 : vector<4x32xf32>
    %141 = arith.negf %140 : vector<4x32xf32>
    %142 = math.exp %141 : vector<4x32xf32>
    %cst_50 = arith.constant 1.000000e+00 : f32
    %143 = vector.broadcast %cst_50 : f32 to vector<4x32xf32>
    %144 = arith.addf %143, %142 : vector<4x32xf32>
    %145 = arith.divf %143, %144 : vector<4x32xf32>
    %146 = vector.extract_strided_slice %134 {offsets = [0, 32], sizes = [4, 32], strides = [1, 1]} : vector<4x96xf32> to vector<4x32xf32>
    %147 = vector.extract_strided_slice %137 {offsets = [0, 32], sizes = [4, 32], strides = [1, 1]} : vector<4x96xf32> to vector<4x32xf32>
    %148 = arith.addf %146, %147 : vector<4x32xf32>
    %149 = arith.negf %148 : vector<4x32xf32>
    %150 = math.exp %149 : vector<4x32xf32>
    %cst_51 = arith.constant 1.000000e+00 : f32
    %151 = vector.broadcast %cst_51 : f32 to vector<4x32xf32>
    %152 = arith.addf %151, %150 : vector<4x32xf32>
    %153 = arith.divf %151, %152 : vector<4x32xf32>
    %154 = vector.extract_strided_slice %134 {offsets = [0, 64], sizes = [4, 32], strides = [1, 1]} : vector<4x96xf32> to vector<4x32xf32>
    %155 = vector.extract_strided_slice %137 {offsets = [0, 64], sizes = [4, 32], strides = [1, 1]} : vector<4x96xf32> to vector<4x32xf32>
    %156 = arith.mulf %145, %155 : vector<4x32xf32>
    %157 = arith.addf %154, %156 : vector<4x32xf32>
    %158 = math.tanh %157 : vector<4x32xf32>
    %cst_52 = arith.constant 1.000000e+00 : f32
    %159 = vector.broadcast %cst_52 : f32 to vector<4x32xf32>
    %160 = arith.subf %159, %153 : vector<4x32xf32>
    %161 = arith.mulf %160, %158 : vector<4x32xf32>
    %162 = arith.mulf %153, %123 : vector<4x32xf32>
    %163 = arith.addf %161, %162 : vector<4x32xf32>
    %c0_53 = arith.constant 0 : index
    %164 = arith.index_cast %131 : i32 to index
    %c0_54 = arith.constant 0 : index
    %c0_55 = arith.constant 0 : index
    %165 = vector.load %arg5[%c0_53, %164, %c0_54, %c0_55] : memref<1x4x4x32xf32, #tpu.memory_space<vmem>>, vector<1x1x4x32xf32>
    %166 = vector.shape_cast %165 : vector<1x1x4x32xf32> to vector<4x32xf32>
    %167 = vector.shape_cast %163 : vector<4x32xf32> to vector<1x1x4x32xf32>
    tpu.vector_store %arg5[%c0_53, %164, %c0_54, %c0_55], %167 {strides = array<i32>} : memref<1x4x4x32xf32, #tpu.memory_space<vmem>>, vector<1x1x4x32xf32>,
    %c4_i32 = arith.constant 4 : i32
    %c0_56 = arith.constant 0 : index
    %c0_57 = arith.constant 0 : index
    %168 = vector.load %arg7[%c0_56, %c0_57] : memref<4x32xf32, #tpu.memory_space<vmem>>, vector<4x32xf32>
    tpu.vector_store %arg7[%c0_56, %c0_57], %163 {strides = array<i32>} : memref<4x32xf32, #tpu.memory_space<vmem>>, vector<4x32xf32>,
    %c1_i32_58 = arith.constant 1 : i32
    %169 = arith.cmpi eq, %arg1, %c1_i32_58 : i32
    %170 = arith.extui %169 : i1 to i32
    %c0_i32_59 = arith.constant 0 : i32
    %171 = arith.cmpi ne, %170, %c0_i32_59 : i32
    scf.if %171 {
      %c0_60 = arith.constant 0 : index
      %c0_61 = arith.constant 0 : index
      %c0_62 = arith.constant 0 : index
      %172 = vector.load %arg6[%c0_60, %c0_61, %c0_62] : memref<1x4x32xf32, #tpu.memory_space<vmem>>, vector<1x4x32xf32>
      %173 = vector.shape_cast %172 : vector<1x4x32xf32> to vector<4x32xf32>
      %174 = vector.shape_cast %163 : vector<4x32xf32> to vector<1x4x32xf32>
      tpu.vector_store %arg6[%c0_60, %c0_61, %c0_62], %174 {strides = array<i32>} : memref<1x4x32xf32, #tpu.memory_space<vmem>>, vector<1x4x32xf32>,
    } else {
    }
    return
  }
  func.func @transform_0(%arg0: i32, %arg1: i32) -> (i32, i32, i32, i32) {
    %c2_i32 = arith.constant 2 : i32
    %0 = arith.muli %c2_i32, %arg1 : i32
    %c1_i32 = arith.constant 1 : i32
    %1 = arith.subi %c1_i32, %0 : i32
    %2 = arith.muli %arg0, %1 : i32
    %3 = arith.addi %arg1, %2 : i32
    %c0_i32 = arith.constant 0 : i32
    %c0_i32_0 = arith.constant 0 : i32
    %c0_i32_1 = arith.constant 0 : i32
    return %arg0, %3, %c0_i32, %c0_i32_0 : i32, i32, i32, i32
  }
  func.func @transform_1(%arg0: i32, %arg1: i32) -> (i32, i32, i32) {
    %c0_i32 = arith.constant 0 : i32
    %c0_i32_0 = arith.constant 0 : i32
    %c0_i32_1 = arith.constant 0 : i32
    return %arg0, %c0_i32, %c0_i32_0 : i32, i32, i32
  }
  func.func @transform_2(%arg0: i32, %arg1: i32) -> (i32, i32, i32) {
    %c0_i32 = arith.constant 0 : i32
    %c0_i32_0 = arith.constant 0 : i32
    %c0_i32_1 = arith.constant 0 : i32
    return %arg0, %c0_i32, %c0_i32_0 : i32, i32, i32
  }
  func.func @transform_3(%arg0: i32, %arg1: i32) -> (i32, i32, i32, i32) {
    %c2_i32 = arith.constant 2 : i32
    %0 = arith.muli %c2_i32, %arg1 : i32
    %c1_i32 = arith.constant 1 : i32
    %1 = arith.subi %c1_i32, %0 : i32
    %2 = arith.muli %arg0, %1 : i32
    %3 = arith.addi %arg1, %2 : i32
    %c0_i32 = arith.constant 0 : i32
    %c0_i32_0 = arith.constant 0 : i32
    %c0_i32_1 = arith.constant 0 : i32
    return %arg0, %3, %c0_i32, %c0_i32_0 : i32, i32, i32, i32
  }
  func.func @transform_4(%arg0: i32, %arg1: i32) -> (i32, i32, i32) {
    %c0_i32 = arith.constant 0 : i32
    %c0_i32_0 = arith.constant 0 : i32
    %c0_i32_1 = arith.constant 0 : i32
    return %arg0, %c0_i32, %c0_i32_0 : i32, i32, i32
  }
}

</mosaic_0001>

<bundles_post_ra>
// kernel: encoder_rnn_forward.5
= control target key start
LH: loop header
LB: loop body
LE: loop exit
PB: predicated region body
PF: predicated region fallthrough
CT: control target
= control target key end

     0   :  { %vm34_vm0 = vcmask 257024   ;;  %s175_s0 = inlined_call_operand.vmem [shape: f32[2,8,4,32], index: 0, kind: input, shape index: {}]   ;;  %s176_s1 = inlined_call_operand.hbm [shape: f32[8,4,32], index: 1, kind: output, shape index: {}]  }
   0x1   :  { %v9_v0 = vld [vmem:[%s175_s0] sm:$0xf]  ;;  %v10_v3 = vld [vmem:[%s175_s0 + $0x4] sm:$0xf]  ;;  %v11_v5 = vld [vmem:[%s175_s0 + $0x8] sm:$0xf] }
   0x2   :  { %v59_v1 = vld [vmem:[%s175_s0 + $0x20] sm:$0xf]  ;;  %v60_v4 = vld [vmem:[%s175_s0 + $0x24] sm:$0xf]  ;;  %v61_v7 = vld [vmem:[%s175_s0 + $0x28] sm:$0xf] }
   0x3   :  { %v26_v2 = vadd.f32 %v59_v1, %v9_v0  ;;  %v27_v6 = vadd.f32 %v60_v4, %v10_v3  ;;  %v12_v8 = vld [vmem:[%s175_s0 + $0xc] sm:$0xf]  ;;  %v28_v10 = vadd.f32 %v61_v7, %v11_v5  ;;  %v13_v12 = vld [vmem:[%s175_s0 + $0x10] sm:$0xf]  ;;  %v14_v14 = vld [vmem:[%s175_s0 + $0x14] sm:$0xf] }
   0x4   :  { %v62_v9 = vld [vmem:[%s175_s0 + $0x2c] sm:$0xf]  ;;  %v63_v13 = vld [vmem:[%s175_s0 + $0x30] sm:$0xf]  ;;  %v64_v16 = vld [vmem:[%s175_s0 + $0x34] sm:$0xf] }
   0x5   :  { %35 = vst.msk [vmem:[#allocation2] sm:$0xf] %vm34_vm0, %v26_v2  ;;  %v29_v11 = vadd.f32 %v62_v9, %v12_v8  ;;  %36 = vst.msk [vmem:[#allocation2 + $0x4] sm:$0xf] %vm34_vm0, %v27_v6  ;;  %v30_v15 = vadd.f32 %v63_v13, %v13_v12  ;;  %v15_v17 = vld [vmem:[%s175_s0 + $0x18] sm:$0xf]  ;;  %v31_v19 = vadd.f32 %v64_v16, %v14_v14 }
   0x6   :  { %v65_v18 = vld [vmem:[%s175_s0 + $0x38] sm:$0xf]  ;;  %37 = vst.msk [vmem:[#allocation2 + $0x8] sm:$0xf] %vm34_vm0, %v28_v10  ;;  %v16_v21 = vld [vmem:[%s175_s0 + $0x1c] sm:$0xf] }
   0x7   :  { %38 = vst.msk [vmem:[#allocation2 + $0xc] sm:$0xf] %vm34_vm0, %v29_v11  ;;  %v32_v20 = vadd.f32 %v65_v18, %v15_v17  ;;  %v66_v22 = vld [vmem:[%s175_s0 + $0x3c] sm:$0xf] }
   0x8   :  { %6 = vsyncpa [#allocation3], 0  ;;  %39 = vst.msk [vmem:[#allocation2 + $0x10] sm:$0xf] %vm34_vm0, %v30_v15  ;;  %v33_v23 = vadd.f32 %v66_v22, %v16_v21  ;;  %s94_s9 = smov [#allocation2]  }
   0x9   :  { %s48_s10 = sshll.u32 %s94_s9, 4  ;;  %40 = vst.msk [vmem:[#allocation2 + $0x14] sm:$0xf] %vm34_vm0, %v31_v19  ;;  %41 = vst.msk [vmem:[#allocation2 + $0x18] sm:$0xf] %vm34_vm0, %v32_v20  ;;  %s49_s10 = int_to_ptr.vmem [resolvable:$true] %s48_s10 }
   0xa   :  { %42 = vst.msk [vmem:[#allocation2 + $0x1c] sm:$0xf] %vm34_vm0, %v33_v23  ;;  %s70_s11 = scalar_lea.vmem %s49_s10, 512  ;;  %p75_p1 = scmp.lt.s32.totalorder %s49_s10, %s49_s10 }
   0xb   :  { %p71_p0 = scmp.ne.s32.totalorder %s49_s10, %s70_s11  ;;  %p76_p2 = scmp.lt.s32.totalorder %s70_s11, %s70_s11 }
   0xd   :  { %p77_p3 = por %p76_p2, %p75_p1 }
   0xf   :  { %p78_p4 = pnand %p77_p3, %p71_p0 }
  0x11   :  { %81 = shalt.err (!%p78_p4)
}
  0x12   :  { %s82_s13 = scalar_lea.hbm %s176_s1, 512 }
  0x13   :  { %p83_p5 = scmp.ne.s32.totalorder %s176_s1, %s82_s13  ;;  %p86_p6 = scmp.lt.u32.totalorder %s82_s13, %s176_s1 }
  0x15   :  { %p88_p7 = pnand %p86_p6, %p83_p5 }
  0x17   :  { %91 = shalt.err (!%p88_p7)
}
  0x18   :  { %s95_s18 = smov 64   ;;  %s96_s19 = smov 4  }
  0x19   :  { %54 = dma.vmem_to_hbm [thread:$0]  %s49_s10, 512, %s176_s1, [#allocation3], %s95_s18, %s95_s18, %s96_s19  }
  0x1a   :  { %92 = dma.done.wait [#allocation3], 512  }
  0x1b   :  { %93 = vsyncadd [#allocation3], 4294966784 }
  0x1c   :  { %58 = vsyncpa [#allocation3], 1 }

// kernel: encoder_rnn_forward.3
= control target key start
LH: loop header
LB: loop body
LE: loop exit
PB: predicated region body
PF: predicated region fallthrough
CT: control target
= control target key end

     0   :  { %s1244_s15 = smov 0   ;;  %s1246_s16 = smov 0   ;;  %s1389_s0 = inlined_call_operand.vmem [shape: f32[2,8,4,96], index: 0, kind: input, shape index: {}]   ;;  %s1390_s1 = inlined_call_operand.vmem [shape: f32[2,32,96], index: 1, kind: input, shape index: {}]   ;;  %s1391_s2 = inlined_call_operand.vmem [shape: f32[2,1,96], index: 2, kind: input, shape index: {}]   ;;  %s1392_s3 = inlined_call_operand.vmem [shape: f32[2,8,4,32], index: 3, kind: output, shape index: {0}]   ;;  %s1393_s4 = inlined_call_operand.vmem [shape: f32[2,4,32], index: 4, kind: output, shape index: {1}]  }
   0x1   :  { %s1248_s17 = smov 0   ;;  %s1250_s18 = smov 0  }
   0x2   :  { %s1252_s19 = smov 0  }
   0x3 LB: > { %s24_s20 = sadd.s32 1, %s1202_s17  ;;  %s27_s21 = sadd.s32 1, %s1206_s18  ;;  %s1210_s19 = sphi %s1252_s19, %s15_s19   ;;  %s1206_s18 = sphi %s1250_s18, %s1397_s18   ;;  %s1202_s17 = sphi %s1248_s17, %s1396_s17   ;;  %s1198_s16 = sphi %s1246_s16, %s1395_s16   ;;  %s1194_s15 = sphi %s1244_s15, %s1394_s15  }
   0x4   : > { %p25_p0 = scmp.ge.s32.totalorder %s24_s20, 2  ;;  %p977_p1 = scmp.ge.s32.totalorder %s1210_s19, 1 }
   0x5   : > { %p228_p2 = scmp.lt.s32.totalorder %s1210_s19, 5 }
   0x6   : > { %s1399_s20 = smov (%p25_p0, %s24_s20), 0  ;;  %s1401_s21 = smov (!%p25_p0, %s27_s21), %s1206_s18 }
   0x7   : > { %p229_p3 = pnand %p977_p1, %p228_p2  ;;  %p29_p4 = scmp.ge.s32.totalorder %s1401_s21, 2 }
   0x8   : > { %s978_s22 = sshll.u32 (!%p229_p3), %s1194_s15, 1  ;;  %p287_p5 = scmp.lt.s32.totalorder (!%p229_p3), %s1198_s16, 1 }
   0x9   : > { %s1403_s21 = smov (%p29_p4, %s1401_s21), 0  ;;  %232 = sbr.rel (%p229_p3) target bundleno = 2812 (0xafc), region = 32 }
   0xa   : > { %s283_s23 = ssub.s32 (!%p229_p3), 1, %s978_s22  ;;  %p989_p7 = scmp.ne.s32.totalorder (!%p229_p3), %s1194_s15, 0 }
   0xb   : > { %s284_s24 = smul.u32 (!%p229_p3), %s1198_s16, %s283_s23 }
   0xd   : > { %s285_s26 = sadd.s32 (!%p229_p3), %s1194_s15, %s284_s24 }
   0xe   : > { %s979_s27 = sshll.u32 (!%p229_p3), %s285_s26, 2 }
   0xf   : > { %p289_p6 = scmp.lt.s32.totalorder (!%p229_p3), %s979_s27, 7 }
  0x10   : > { %s1282_s25 = scalar_select %p287_p5, %s1198_s16, 1 }
  0x11   : > { %s1405_s27 = smov (!%p289_p6, %s979_s27), 7  ;;  %333 = sbr.rel (%p989_p7) target bundleno = 24 (0x18), region = 36 }
  0x12   : > { %s980_s28 = sshll.u32 %s1282_s25, 3  ;;  %s1012_s29 = sshll.u32 %s1282_s25, 5  ;;  %vm334_vm0 = vcmask (!%p989_p7), 257024   ;;  %v1212_v0 = vmov (!%p989_p7), 0.0  }
  0x13   : > { %s304_s6 = scalar_lea.vmem %s1390_s1, %s1012_s29  ;;  %s307_s9 = scalar_lea.vmem %s1391_s2, %s1282_s25  ;;  %335 = vst.msk [vmem:[#allocation2] sm:$0xf] (!%p989_p7), %vm334_vm0, %v1212_v0 }
  0x14   : > { %s988_s10 = sshll.u32 %s1282_s25, 2  ;;  %s292_s11 = sadd.s32 %s980_s28, %s1405_s27 }
  0x15   : > { %s1298_s14 = scalar_lea.vmem %s1393_s4, %s988_s10  ;;  %s981_s22 = sshll.u32 %s292_s11, 2 }
  0x16   : > { %s1303_s26 = scalar_lea.vmem %s1389_s0, %s981_s22  ;;  %s1308_s5 = scalar_lea.vmem %s1392_s3, %s981_s22 }
  0x18 PF: > { %v336_v1 = vld [vmem:[%s304_s6] sm:$0xff]  ;;  %v337_v2 = vld [vmem:[%s304_s6 + $0x8] sm:$0xff]  ;;  %v338_v3 = vld [vmem:[%s304_s6 + $0x10] sm:$0xff]  ;;  %v1213_v4 = vmov 0.0|0.0   ;;  %vm1214_vm1 = vmmov 0   ;;  %v1215_v7 = vmov 0.0  }
  0x19   : > { %1077 = vmatprep.subr.bf16.mxu0 %v1213_v4  ;;  %v1078_v5 = vpack.c.bf16 %v337_v2, %v336_v1  ;;  %v339_v6 = vld [vmem:[%s304_s6 + $0x18] sm:$0xff]  ;;  %1041 = vmatprep.mubr.msk.f32.mxu0 %vm1214_vm1, %v1215_v7  ;;  %vm352_vm2 = vcmask 261120   ;;  %v1327_v10 = vld [vmem:[%s307_s9] ss:$0 sm:$0xff]  ;;  %s1216_s6 = smov 64   ;;  %s990_s7 = smul.u32 12, %s1198_s16 }
  0x1a   : > { %1083 = vmatprep.subr.bf16.mxu1 %v1213_v4  ;;  %1052 = vmatprep.mubr.msk.f32.mxu1 %vm1214_vm1, %v1215_v7  ;;  %v1081_v8 = vpack.c.bf16 %v339_v6, %v338_v3  ;;  %v341_v9 = vld [vmem:[#allocation2] sm:$0xf]  ;;  %s1217_s25 = smov 96   ;;  %s1218_s9 = smov 32   ;;  %vm460_vm3 = vcmask 257024  }
  0x1b   : > { %1079 = vmatpush3.bf16.msra.mxu0 %v1078_v5  ;;  %1085 = vmatpush3.bf16.msra.mxu1 %v1078_v5  ;;  %s344_s8 = scalar_lea.vmem %s1303_s26, %s990_s7  ;;  %s459_s10 = scalar_lea.vmem %s1308_s5, %s990_s7 }
  0x1c   : > { %1080 = vmatprep.subr.bf16.mxu0 %v1213_v4  ;;  %1086 = vmatprep.subr.bf16.mxu1 %v1213_v4  ;;  %v345_v14 = vld [vmem:[%s344_s8] sm:$0xf]  ;;  %s994_s11 = sshll.u32 %s1198_s16, 2  ;;  %s570_s22 = ssub.s32 2, %s1198_s16 }
  0x1d   : > { %s887_s12 = scalar_lea.vmem %s1303_s26, %s994_s11  ;;  %s890_s13 = scalar_lea.vmem %s1308_s5, %s994_s11 }
  0x1e   : > { %v995_v35 = vld [vmem:[%s887_s12 + $0x4] sm:$0xf]  ;;  %s1000_s23 = sshll.u32 %s570_s22, 2  ;;  %s1003_s29 = smul.u32 4294967284, %s1198_s16 }
  0x1f   : > { %1082 = vmatpush3.bf16.msra.mxu0 %v1081_v8  ;;  %1088 = vmatpush3.bf16.msra.mxu1 %v1081_v8  ;;  %s572_s24 = scalar_lea.vmem %s1303_s26, %s1000_s23  ;;  %s676_s30 = scalar_lea.vmem %s1308_s5, %s1000_s23 }
  0x20   : > { %1089 = vmatprep.subr.bf16.mxu0 %v1213_v4  ;;  %1095 = vmatprep.subr.bf16.mxu1 %v1213_v4  ;;  %v573_v55 = vld [vmem:[%s572_s24] sm:$0xf]  ;;  %s898_s27 = scalar_lea.vmem %s1303_s26, %s1003_s29  ;;  %s902_s16 = scalar_lea.vmem %s1308_s5, %s1003_s29 }
  0x21   : > { %p1009_p8 = scmp.ne.s32.totalorder %s1194_s15, 1 }
  0x22   : > { %1042 = vmatmul.mubr.msk.f32.vlgmr.msra.gmra.mrb[0].mxu0 %vm352_vm2, %v341_v9 }
  0x23   : > { %1091 = vmatpush3.bf16.msra.mxu0 %v1078_v5  ;;  %1063 = vmatprep.mubr.msk.f32.mxu0 %vm1214_vm1, %v1215_v7 }
  0x24   : > { %1092 = vmatprep.subr.bf16.mxu0 %v1213_v4 }
  0x27   : > { %1094 = vmatpush3.bf16.msra.mxu0 %v1081_v8 }
  0xf5   : > { %v422_v11 = vpop.f32.mrb[0].mxu0 }
  0xf6   : > { %v423_v12 = vadd.f32 %v1327_v10, %v422_v11  ;;  %v1043_v13 = vpop.f32.mrb[1].mxu0 }
  0xf8   : > { %434 = vrot.lane.b32.xlu0 %v423_v12, %s1216_s6  ;;  %v426_v15 = vadd.f32 %v423_v12, %v345_v14  ;;  %v1004_v12 = vld [vmem:[%s898_s27 + $0xc] sm:$0xf] }
  0xfa   : > { %v993_v16 = vmul.f32 -1.442695, %v426_v15 }
  0xfc   : > { %1148 = vpow2.f32 %v993_v16 }
 0x106   : > { %v1149_v17 = vpop.eup %1148 }
 0x107   : > { %v430_v18 = vadd.f32 1.0, %v1149_v17 }
 0x109   : > { %1150 = vrcp.f32 %v430_v18 }
 0x113   : > { %v1151_v19 = vpop.eup %1150 }
 0x114   : > { %v444_v26 = vsub.f32 1.0, %v1151_v19 }
 0x16a   : > { %v435_v20 = vpop.permute.xlu0 %434 }
 0x16b   : > { %v437_v21 = vmul.f32 %v1151_v19, %v435_v20 }
 0x16d   : > { %439 = vrot.lane.b32.xlu0 %v437_v21, %s1216_s6 }
 0x1df   : > { %v440_v22 = vpop.permute.xlu0 %439 }
 0x1e0   : > { %v442_v23 = vadd.f32 %v440_v22, %v345_v14 }
 0x1e2   : > { %1152 = vtanh.f32 %v442_v23 }
 0x1ec   : > { %v1153_v24 = vpop.eup %1152 }
 0x1ed   : > { %446 = vrot.lane.b32.xlu1 %v1153_v24, %s1217_s25 }
 0x1f1   : > { %450 = vrot.lane.b32.xlu1 %v341_v9, %s1218_s9 }
 0x25f   : > { %v447_v25 = vpop.permute.xlu1 %446 }
 0x260   : > { %v449_v28 = vmul.f32 %v447_v25, %v444_v26 }
 0x263   : > { %v451_v27 = vpop.permute.xlu1 %450 }
 0x264   : > { %v453_v29 = vmul.f32 %v1151_v19, %v451_v27 }
 0x266   : > { %v454_v30 = vadd.f32 %v453_v29, %v449_v28 }
 0x268   : > { %456 = vrot.lane.b32.xlu0 %v454_v30, %s1217_s25 }
 0x2da   : > { %v457_v31 = vpop.permute.xlu0 %456 }
 0x2db   : > { %461 = vst.msk [vmem:[%s459_s10] sm:$0xf] %vm460_vm3, %v457_v31  ;;  %1053 = vmatmul.mubr.msk.f32.vlgmr.msra.gmra.mrb[0].mxu1 %vm352_vm2, %v457_v31 }
 0x2dc   : > { %1097 = vmatpush3.bf16.msra.mxu1 %v1078_v5  ;;  %1074 = vmatprep.mubr.msk.f32.mxu1 %vm1214_vm1, %v1215_v7 }
 0x2dd   : > { %1098 = vmatprep.subr.bf16.mxu1 %v1213_v4 }
 0x2e0   : > { %1100 = vmatpush3.bf16.msra.mxu1 %v1081_v8 }
 0x3ae   : > { %v534_v32 = vpop.f32.mrb[0].mxu1 }
 0x3af   : > { %v535_v33 = vadd.f32 %v1327_v10, %v534_v32  ;;  %v1054_v34 = vpop.f32.mrb[1].mxu1 }
 0x3b1   : > { %546 = vrot.lane.b32.xlu1 %v535_v33, %s1216_s6  ;;  %v538_v36 = vadd.f32 %v995_v35, %v535_v33 }
 0x3b3   : > { %v997_v37 = vmul.f32 -1.442695, %v538_v36 }
 0x3b5   : > { %1154 = vpow2.f32 %v997_v37 }
 0x3bf   : > { %v1155_v38 = vpop.eup %1154 }
 0x3c0   : > { %v542_v39 = vadd.f32 1.0, %v1155_v38 }
 0x3c2   : > { %1156 = vrcp.f32 %v542_v39 }
 0x3cc   : > { %v1157_v40 = vpop.eup %1156 }
 0x3cd   : > { %v556_v46 = vsub.f32 1.0, %v1157_v40  ;;  %v562_v48 = vmul.f32 %v1157_v40, %v454_v30 }
 0x423   : > { %v547_v41 = vpop.permute.xlu1 %546 }
 0x424   : > { %v549_v42 = vmul.f32 %v1157_v40, %v547_v41 }
 0x426   : > { %551 = vrot.lane.b32.xlu0 %v549_v42, %s1216_s6 }
 0x498   : > { %v552_v43 = vpop.permute.xlu0 %551 }
 0x499   : > { %v554_v44 = vadd.f32 %v995_v35, %v552_v43 }
 0x49b   : > { %1158 = vtanh.f32 %v554_v44 }
 0x4a5   : > { %v1159_v45 = vpop.eup %1158 }
 0x4a6   : > { %558 = vrot.lane.b32.xlu1 %v1159_v45, %s1217_s25 }
 0x518   : > { %v559_v47 = vpop.permute.xlu1 %558 }
 0x519   : > { %v561_v49 = vmul.f32 %v559_v47, %v556_v46 }
 0x51b   : > { %v563_v50 = vadd.f32 %v562_v48, %v561_v49 }
 0x51d   : > { %565 = vrot.lane.b32.xlu0 %v563_v50, %s1217_s25 }
 0x58f   : > { %v566_v51 = vpop.permute.xlu0 %565 }
 0x590   : > { %999 = vst.msk [vmem:[%s890_s13 + $0x4] sm:$0xf] %vm460_vm3, %v566_v51  ;;  %1064 = vmatmul.mubr.msk.f32.vlgmr.msra.gmra.mrb[2].mxu0 %vm352_vm2, %v566_v51 }
 0x663   : > { %v642_v52 = vpop.f32.mrb[2].mxu0 }
 0x664   : > { %v643_v53 = vadd.f32 %v1327_v10, %v642_v52  ;;  %v1065_v54 = vpop.f32.mrb[3].mxu0 }
 0x666   : > { %654 = vrot.lane.b32.xlu1 %v643_v53, %s1216_s6  ;;  %v646_v56 = vadd.f32 %v643_v53, %v573_v55 }
 0x668   : > { %v1002_v57 = vmul.f32 -1.442695, %v646_v56 }
 0x66a   : > { %1160 = vpow2.f32 %v1002_v57 }
 0x674   : > { %v1161_v58 = vpop.eup %1160 }
 0x675   : > { %v650_v59 = vadd.f32 1.0, %v1161_v58 }
 0x677   : > { %1162 = vrcp.f32 %v650_v59 }
 0x681   : > { %v1163_v60 = vpop.eup %1162 }
 0x682   : > { %v664_v2 = vsub.f32 1.0, %v1163_v60  ;;  %v670_v4 = vmul.f32 %v1163_v60, %v563_v50 }
 0x6d8   : > { %v655_v61 = vpop.permute.xlu1 %654 }
 0x6d9   : > { %v657_v62 = vmul.f32 %v1163_v60, %v655_v61 }
 0x6db   : > { %659 = vrot.lane.b32.xlu0 %v657_v62, %s1216_s6 }
 0x74d   : > { %v660_v63 = vpop.permute.xlu0 %659 }
 0x74e   : > { %v662_v0 = vadd.f32 %v660_v63, %v573_v55 }
 0x750   : > { %1164 = vtanh.f32 %v662_v0 }
 0x75a   : > { %v1165_v1 = vpop.eup %1164 }
 0x75b   : > { %666 = vrot.lane.b32.xlu1 %v1165_v1, %s1217_s25 }
 0x7cd   : > { %v667_v3 = vpop.permute.xlu1 %666 }
 0x7ce   : > { %v669_v5 = vmul.f32 %v667_v3, %v664_v2 }
 0x7d0   : > { %v671_v6 = vadd.f32 %v670_v4, %v669_v5 }
 0x7d2   : > { %673 = vrot.lane.b32.xlu0 %v671_v6, %s1217_s25 }
 0x844   : > { %v674_v7 = vpop.permute.xlu0 %673 }
 0x845   : > { %677 = vst.msk [vmem:[%s676_s30] sm:$0xf] %vm460_vm3, %v674_v7  ;;  %1075 = vmatmul.mubr.msk.f32.vlgmr.msra.gmra.mrb[2].mxu1 %vm352_vm2, %v674_v7 }
 0x918   : > { %v751_v8 = vpop.f32.mrb[2].mxu1 }
 0x919   : > { %v752_v9 = vadd.f32 %v1327_v10, %v751_v8  ;;  %v1076_v11 = vpop.f32.mrb[3].mxu1 }
 0x91b   : > { %763 = vrot.lane.b32.xlu1 %v752_v9, %s1216_s6  ;;  %v755_v13 = vadd.f32 %v1004_v12, %v752_v9 }
 0x91d   : > { %v1006_v14 = vmul.f32 -1.442695, %v755_v13 }
 0x91f   : > { %1166 = vpow2.f32 %v1006_v14 }
 0x929   : > { %v1167_v15 = vpop.eup %1166 }
 0x92a   : > { %v759_v16 = vadd.f32 1.0, %v1167_v15 }
 0x92c   : > { %1168 = vrcp.f32 %v759_v16 }
 0x936   : > { %v1169_v17 = vpop.eup %1168 }
 0x937   : > { %v773_v22 = vsub.f32 1.0, %v1169_v17  ;;  %v779_v24 = vmul.f32 %v1169_v17, %v671_v6 }
 0x98d   : > { %v764_v18 = vpop.permute.xlu1 %763 }
 0x98e   : > { %v766_v19 = vmul.f32 %v1169_v17, %v764_v18 }
 0x990   : > { %768 = vrot.lane.b32.xlu0 %v766_v19, %s1216_s6 }
 0xa02   : > { %v769_v20 = vpop.permute.xlu0 %768 }
 0xa03   : > { %v771_v10 = vadd.f32 %v1004_v12, %v769_v20 }
 0xa05   : > { %1170 = vtanh.f32 %v771_v10 }
 0xa0f   : > { %v1171_v21 = vpop.eup %1170 }
 0xa10   : > { %775 = vrot.lane.b32.xlu1 %v1171_v21, %s1217_s25 }
 0xa82   : > { %v776_v23 = vpop.permute.xlu1 %775 }
 0xa83   : > { %v778_v25 = vmul.f32 %v776_v23, %v773_v22 }
 0xa85   : > { %v780_v26 = vadd.f32 %v779_v24, %v778_v25 }
 0xa87   : > { %782 = vrot.lane.b32.xlu0 %v780_v26, %s1217_s25 }
 0xaf4   : > { %791 = sbr.rel (%p1009_p8) target bundleno = 2812 (0xafc), region = 40 }
 0xaf9   : > { %v783_v27 = vpop.permute.xlu0 %782 }
 0xafa   : > { %1008 = vst.msk [vmem:[%s902_s16 + $0xc] sm:$0xf] %vm460_vm3, %v783_v27  ;;  %787 = vst.msk [vmem:[#allocation2] sm:$0xf] %vm460_vm3, %v783_v27 }
 0xafb   : > { %792 = vst.msk [vmem:[%s1298_s14] sm:$0xf] %vm460_vm3, %v783_v27 }
 0xafc PF: > { %s15_s19 = sadd.s32 1, %s1210_s19   ;;  %s1394_s15 = smov %s1202_s17 }
 0xafd   : > { %p12_p9 = scmp.ge.s32.totalorder %s15_s19, 6   ;;  %s1395_s16 = smov %s1206_s18 }
 0xafe   : > { %s1396_s17 = smov %s1399_s20  ;;  %s1397_s18 = smov %s1403_s21 }
 0xaff   :  { %14 = sbr.rel (!%p12_p9) target bundleno = 3 (0x3), region = 96 }

</bundles_post_ra>
